<compile_context>
chip_gen: v7x
topology: tpu7x:2x2x1
jax: 0.10.0
libtpu: 0.0.40
codegen_flags: <defaults>
</compile_context>

<pallas_src>
import jax
import jax.numpy as jnp
import numpy as np
from jax.experimental import pallas as pl
from jax.experimental.pallas import tpu as pltpu


# --------------------------- Pallas kernel ---------------------------------

def conv_bn_relu_kernel(xp_ref, wb_ref, shift_ref, o_ref):
    # xp_ref:    (nb, B+2, B+2)   zero-padded input images (f32)
    # wb_ref:    (3, B+2, B*C)    banded conv weights (BN scale pre-folded)
    # shift_ref: (1, B*C)         folded conv-bias + BN shift, per output col
    # o_ref:     (nb, B, B*C)     lane-dense output tile
    nb, H, _ = o_ref.shape
    for b in range(nb):                     # static unroll; nb is small (<=32)
        acc = jnp.dot(xp_ref[b, 0:H, :], wb_ref[0],
                      preferred_element_type=jnp.float32)
        acc += jnp.dot(xp_ref[b, 1:H + 1, :], wb_ref[1],
                       preferred_element_type=jnp.float32)
        acc += jnp.dot(xp_ref[b, 2:H + 2, :], wb_ref[2],
                       preferred_element_type=jnp.float32)
        o_ref[b] = jnp.maximum(acc + shift_ref[...], 0.0).astype(o_ref.dtype)


# --------------------------- wrapper ----------------------------------------

def conv_block_forward(x, weight, bias, gamma, beta, running_mean, running_var,
                       board_size, *, eps=1e-5, channels_last=False):
    """x: any shape that views to (-1, 1, board_size, board_size), float32.

    Returns NCHW (N, 128, B, B) by default (module semantics); pass
    channels_last=True to get the lane-dense NHWC result with no transpose.
    """
    B = board_size
    C = weight.shape[0]                       # 128
    x = x.reshape(-1, 1, B, B).astype(jnp.float32)
    N = x.shape[0]
    H = W = B

    # batch-chunk size: big tiles for big N, but keep >=2 grid steps (v7x 2 TC)
    nb = max(1, min(32, N // 2))
    n_pad = pl.cdiv(N, nb) * nb

    # single pad op: batch padding + spatial halo (conv padding=1)
    xp = jnp.pad(x[:, 0], ((0, n_pad - N), (1, 1), (1, 1)))   # (n_pad, B+2, B+2)

    # ---- fold conv bias + BN (eval mode) into weights / shift ----
    scale = gamma / jnp.sqrt(running_var + eps)               # (C,)
    shift = beta + (bias - running_mean) * scale              # (C,)
    wq = jnp.transpose(weight[:, 0], (1, 2, 0)) * scale       # (3, 3, C) [ky,kx,c]

    # banded weights: Wb[ky, wp, w*C + c] = wq[ky, wp - w, c] if 0 <= wp-w <= 2
    wp_i = jnp.arange(W + 2)[:, None]                         # (W+2, 1)
    w_i = jnp.arange(W)[None, :]                              # (1, W)
    d = wp_i - w_i                                            # (W+2, W)
    wb = jnp.where(((d >= 0) & (d <= 2))[None, :, :, None],
                   wq[:, jnp.clip(d, 0, 2), :], 0.0)          # (3, W+2, W, C)
    wb = wb.reshape(3, W + 2, W * C).astype(jnp.float32)
    shift_row = jnp.tile(shift, (W,)).reshape(1, W * C).astype(jnp.float32)

    grid = (n_pad // nb,)
    out = pl.pallas_call(
        conv_bn_relu_kernel,
        out_shape=jax.ShapeDtypeStruct((n_pad, H, W * C), jnp.float32),
        grid_spec=pltpu.PrefetchScalarGridSpec(
            num_scalar_prefetch=0,
            grid=grid,
            in_specs=[
                pl.BlockSpec((nb, H + 2, W + 2), lambda i: (i, 0, 0)),
                pl.BlockSpec((3, W + 2, W * C), lambda i: (0, 0, 0)),
                pl.BlockSpec((1, W * C), lambda i: (0, 0)),
            ],
            out_specs=pl.BlockSpec((nb, H, W * C), lambda i: (i, 0, 0)),
        ),
        compiler_params=pltpu.CompilerParams(
            dimension_semantics=("parallel",),
            vmem_limit_bytes=32 * 1024 * 1024),
    )(xp, wb, shift_row)

    out = out[:N].reshape(N, H, W, C)          # NHWC, lane-dense, free reshape
    if channels_last:
        return out
    # Layout conversion only to match the PyTorch module's NCHW output.
    return jnp.transpose(out, (0, 3, 1, 2))    # (N, 128, B, B)


# --------------------------- reference (pure JAX) ---------------------------

def conv_block_reference(x, weight, bias, gamma, beta, running_mean, running_var,
                         board_size, *, eps=1e-5):
    B = board_size
    x = x.reshape(-1, 1, B, B)
    y = jax.lax.conv_general_dilated(
        x, weight, window_strides=(1, 1), padding=((1, 1), (1, 1)),
        dimension_numbers=("NCHW", "OIHW", "NCHW"))
    y = y + bias.reshape(1, -1, 1, 1)
    scale = gamma / jnp.sqrt(running_var + eps)
    shift = beta - running_mean * scale
    y = y * scale.reshape(1, -1, 1, 1) + shift.reshape(1, -1, 1, 1)
    return jnp.maximum(y, 0.0)


# --------------------------- main -------------------------------------------

if __name__ == "__main__":
    board_size = 16
    N = 2
    C_OUT = 128

    key = jax.random.PRNGKey(0)
    k_x, k_w, k_b, k_g, k_be, k_m, k_v = jax.random.split(key, 7)

    # input: batch of boards (N, board_size, board_size); forward views to NCHW
    x = jax.random.normal(k_x, (N, board_size, board_size), dtype=jnp.float32)

    # deterministic parameter init (shapes from the module __init__)
    weight = 0.1 * jax.random.normal(k_w, (C_OUT, 1, 3, 3), dtype=jnp.float32)
    bias = 0.1 * jax.random.normal(k_b, (C_OUT,), dtype=jnp.float32)
    gamma = 1.0 + 0.1 * jax.random.normal(k_g, (C_OUT,), dtype=jnp.float32)
    beta = 0.1 * jax.random.normal(k_be, (C_OUT,), dtype=jnp.float32)
    running_mean = 0.1 * jax.random.normal(k_m, (C_OUT,), dtype=jnp.float32)
    running_var = 1.0 + 0.1 * jax.random.uniform(k_v, (C_OUT,), dtype=jnp.float32)

    out = conv_block_forward(x, weight, bias, gamma, beta,
                             running_mean, running_var, board_size)
    out = jax.block_until_ready(out)

    ref = conv_block_reference(x, weight, bias, gamma, beta,
                               running_mean, running_var, board_size)
    np.testing.assert_allclose(np.asarray(out), np.asarray(ref),
                               rtol=1e-5, atol=1e-5)
    assert out.shape == (N, C_OUT, board_size, board_size)
    print("KERNEL_OK")
</pallas_src>

<mosaic_0001>
module attributes {stable_mosaic.version = 11 : i64} {
  func.func @conv_bn_relu_kernel(%arg0: i32, %arg1: memref<1x18x18xf32, #tpu.memory_space<vmem>>, %arg2: memref<3x18x2048xf32, #tpu.memory_space<vmem>>, %arg3: memref<1x2048xf32, #tpu.memory_space<vmem>>, %arg4: memref<1x16x2048xf32, #tpu.memory_space<vmem>>) attributes {dimension_semantics = [#tpu.dimension_semantics<parallel>], iteration_bounds = array<i64: 2>, scalar_prefetch = 0 : i64, scratch_operands = 0 : i64, tpu.core_type = #tpu.core_type<tc>, window_params = [{transform_indices = @transform_0, window_bounds = array<i64: 1, 18, 18>}, {pipeline_mode = #tpu.pipeline_mode<synchronous>, transform_indices = @transform_1, window_bounds = array<i64: 3, 18, 2048>}, {pipeline_mode = #tpu.pipeline_mode<synchronous>, transform_indices = @transform_2, window_bounds = array<i64: 1, 2048>}, {transform_indices = @transform_3, window_bounds = array<i64: 1, 16, 2048>}]} {
    %c0 = arith.constant 0 : index
    %c0_0 = arith.constant 0 : index
    %c0_1 = arith.constant 0 : index
    %0 = vector.load %arg1[%c0, %c0_0, %c0_1] : memref<1x18x18xf32, #tpu.memory_space<vmem>>, vector<1x16x18xf32>
    %1 = vector.shape_cast %0 : vector<1x16x18xf32> to vector<16x18xf32>
    %c0_2 = arith.constant 0 : index
    %c0_3 = arith.constant 0 : index
    %c0_4 = arith.constant 0 : index
    %2 = vector.load %arg2[%c0_2, %c0_3, %c0_4] : memref<3x18x2048xf32, #tpu.memory_space<vmem>>, vector<1x18x2048xf32>
    %3 = vector.shape_cast %2 : vector<1x18x2048xf32> to vector<18x2048xf32>
    %cst = arith.constant dense<0.000000e+00> : vector<16x2048xf32>
    %4 = tpu.matmul %1, %3, %cst {dimension_numbers = #tpu.dot_dimension_numbers<[1], [0], [0], [1], [0, 0, 1, 1], [], []>} : vector<16x18xf32>, vector<18x2048xf32>, vector<16x2048xf32> -> vector<16x2048xf32>
    %c0_5 = arith.constant 0 : index
    %c1 = arith.constant 1 : index
    %c0_6 = arith.constant 0 : index
    %5 = vector.load %arg1[%c0_5, %c1, %c0_6] : memref<1x18x18xf32, #tpu.memory_space<vmem>>, vector<1x16x18xf32>
    %6 = vector.shape_cast %5 : vector<1x16x18xf32> to vector<16x18xf32>
    %c1_7 = arith.constant 1 : index
    %c0_8 = arith.constant 0 : index
    %c0_9 = arith.constant 0 : index
    %7 = vector.load %arg2[%c1_7, %c0_8, %c0_9] : memref<3x18x2048xf32, #tpu.memory_space<vmem>>, vector<1x18x2048xf32>
    %8 = vector.shape_cast %7 : vector<1x18x2048xf32> to vector<18x2048xf32>
    %cst_10 = arith.constant dense<0.000000e+00> : vector<16x2048xf32>
    %9 = tpu.matmul %6, %8, %cst_10 {dimension_numbers = #tpu.dot_dimension_numbers<[1], [0], [0], [1], [0, 0, 1, 1], [], []>} : vector<16x18xf32>, vector<18x2048xf32>, vector<16x2048xf32> -> vector<16x2048xf32>
    %10 = arith.addf %4, %9 : vector<16x2048xf32>
    %c0_11 = arith.constant 0 : index
    %c2 = arith.constant 2 : index
    %c0_12 = arith.constant 0 : index
    %11 = vector.load %arg1[%c0_11, %c2, %c0_12] : memref<1x18x18xf32, #tpu.memory_space<vmem>>, vector<1x16x18xf32>
    %12 = vector.shape_cast %11 : vector<1x16x18xf32> to vector<16x18xf32>
    %c2_13 = arith.constant 2 : index
    %c0_14 = arith.constant 0 : index
    %c0_15 = arith.constant 0 : index
    %13 = vector.load %arg2[%c2_13, %c0_14, %c0_15] : memref<3x18x2048xf32, #tpu.memory_space<vmem>>, vector<1x18x2048xf32>
    %14 = vector.shape_cast %13 : vector<1x18x2048xf32> to vector<18x2048xf32>
    %cst_16 = arith.constant dense<0.000000e+00> : vector<16x2048xf32>
    %15 = tpu.matmul %12, %14, %cst_16 {dimension_numbers = #tpu.dot_dimension_numbers<[1], [0], [0], [1], [0, 0, 1, 1], [], []>} : vector<16x18xf32>, vector<18x2048xf32>, vector<16x2048xf32> -> vector<16x2048xf32>
    %16 = arith.addf %10, %15 : vector<16x2048xf32>
    %c0_17 = arith.constant 0 : index
    %c0_18 = arith.constant 0 : index
    %17 = vector.load %arg3[%c0_17, %c0_18] : memref<1x2048xf32, #tpu.memory_space<vmem>>, vector<1x2048xf32>
    %18 = vector.broadcast %17 : vector<1x2048xf32> to vector<16x2048xf32>
    %19 = arith.addf %16, %18 : vector<16x2048xf32>
    %cst_19 = arith.constant 0.000000e+00 : f32
    %20 = vector.broadcast %cst_19 : f32 to vector<16x2048xf32>
    %21 = arith.maximumf %19, %20 : vector<16x2048xf32>
    %c0_20 = arith.constant 0 : index
    %c0_21 = arith.constant 0 : index
    %c0_22 = arith.constant 0 : index
    %22 = vector.load %arg4[%c0_20, %c0_21, %c0_22] : memref<1x16x2048xf32, #tpu.memory_space<vmem>>, vector<1x16x2048xf32>
    %23 = vector.shape_cast %22 : vector<1x16x2048xf32> to vector<16x2048xf32>
    %24 = vector.shape_cast %21 : vector<16x2048xf32> to vector<1x16x2048xf32>
    tpu.vector_store %arg4[%c0_20, %c0_21, %c0_22], %24 {strides = array<i32>} : memref<1x16x2048xf32, #tpu.memory_space<vmem>>, vector<1x16x2048xf32>,
    return
  }
  func.func @transform_0(%arg0: i32) -> (i32, i32, i32) {
    %c0_i32 = arith.constant 0 : i32
    %c0_i32_0 = arith.constant 0 : i32
    %c0_i32_1 = arith.constant 0 : i32
    return %arg0, %c0_i32, %c0_i32_0 : i32, i32, i32
  }
  func.func @transform_1(%arg0: i32) -> (i32, i32, i32) {
    %c0_i32 = arith.constant 0 : i32
    %c0_i32_0 = arith.constant 0 : i32
    %c0_i32_1 = arith.constant 0 : i32
    %c0_i32_2 = arith.constant 0 : i32
    return %c0_i32, %c0_i32_0, %c0_i32_1 : i32, i32, i32
  }
  func.func @transform_2(%arg0: i32) -> (i32, i32) {
    %c0_i32 = arith.constant 0 : i32
    %c0_i32_0 = arith.constant 0 : i32
    %c0_i32_1 = arith.constant 0 : i32
    return %c0_i32, %c0_i32_0 : i32, i32
  }
  func.func @transform_3(%arg0: i32) -> (i32, i32, i32) {
    %c0_i32 = arith.constant 0 : i32
    %c0_i32_0 = arith.constant 0 : i32
    %c0_i32_1 = arith.constant 0 : i32
    return %arg0, %c0_i32, %c0_i32_0 : i32, i32, i32
  }
}

</mosaic_0001>

<bundles_post_ra>
// kernel: tpu_custom_call.1
= control target key start
LH: loop header
LB: loop body
LE: loop exit
PB: predicated region body
PF: predicated region fallthrough
CT: control target
= control target key end

     0   :  { %8 = vsyncpa [#allocation3], 0  ;;  %s3534_s0 = inlined_call_operand.vmem [shape: f32[2,18,18], index: 0, kind: input, shape index: {}]   ;;  %s3535_s1 = inlined_call_operand.hbm [shape: f32[3,18,2048], index: 1, kind: input, shape index: {}]   ;;  %s3536_s2 = inlined_call_operand.vmem [shape: f32[1,2048], index: 2, kind: input, shape index: {}]   ;;  %s3537_s3 = inlined_call_operand.hbm [shape: f32[2,16,2048], index: 3, kind: output, shape index: {}]  }
   0x1   :  { %9 = vsyncpa [#allocation4], 0 }
   0x2   :  { %11 = vsyncpa [#allocation4 + $0x1], 0  ;;  %s3097_s12 = smov 0   ;;  %s3099_s13 = smov 0  }
   0x3   :  { %s3101_s14 = smov 0   ;;  %s3103_s15 = smov 0  }
   0x4 LB: > { %s3118_s16 = sadd.s32 4294967295, %s3068_s15   ;;  %s2648_s17 = sadd.s32 4294967294, %s3068_s15   ;;  %s3068_s15 = sphi %s3103_s15, %s3553_s15   ;;  %s3064_s14 = sphi %s3101_s14, %s3552_s14   ;;  %s3060_s13 = sphi %s3099_s13, %s3551_s13   ;;  %s3056_s12 = sphi %s3097_s12, %s3550_s12  }
   0x5   : > { %s3122_s18 = sadd.s32 1, %s3068_s15   ;;  %s92_s19 = sadd.s32 1, %s3064_s14 }
   0x6   : > { %s89_s20 = ssub.s32 %s3068_s15, %s3122_s18  ;;  %p102_p0 = scmp.ne.s32.totalorder %s3064_s14, %s3060_s13 }
   0x7   : > { %p90_p1 = scmp.eq.s32.totalorder %s89_s20, 0  ;;  %p103_p2 = scmp.eq.s32.totalorder %s3118_s16, 1 }
   0x8   : > { %p108_p3 = scmp.ne.s32.totalorder %s3060_s13, %s3056_s12  ;;  %p109_p4 = scmp.eq.s32.totalorder %s2648_s17, 1 }
   0x9   : > { %s3133_s21 = scalar_select %p90_p1, %s3064_s14, %s92_s19  }
   0xa   : > { %p3135_p5 = por %p103_p2, %p102_p0  ;;  %p3139_p6 = por %p109_p4, %p108_p3 }
   0xb   : > { %p2649_p7 = scmp.ge.s32.totalorder %s3068_s15, 1  ;;  %p116_p8 = scmp.lt.s32.totalorder %s3068_s15, 3 }
   0xc   : > { %s3541_s22 = scalar_select %p3135_p5, 1, 0 }
   0xd   : > { %s3542_s23 = scalar_select %p3139_p6, 1, 0 }
   0xe   : > { %p3538_p9 = scmp.eq.s32.totalorder %s3118_s16, 0  ;;  %p3146_p10 = pnand %p2649_p7, %p116_p8 }
   0xf   : > { %s3070_s25 = smov [#allocation2]   ;;  %s2974_s30 = scalar_lea.hbm %s3535_s1, 18432 }
  0x10   : > { %s3543_s24 = scalar_select %p3146_p10, 1, 0 }
  0x11   : > { %s128_s26 = sshll.u32 %s3070_s25, 4  ;;  %p2925_p11 = pneg %p3146_p10  ;;  %s129_s26 = int_to_ptr.vmem [resolvable:$true] %s128_s26 }
  0x12   : > { %p2975_p13 = scmp.ne.s32.totalorder %s3535_s1, %s2974_s30  ;;  %p2981_p3 = scmp.lt.u32.totalorder %s2974_s30, %s3535_s1 }
  0x13   : > { %p3154_p12 = pnand %p3538_p9, %p2925_p11 }
  0x15   : > { %p2976_p0 = pneg %p3154_p12 }
  0x17   : > { %p2977_p1 = pnand %p2976_p0, %p2975_p13 }
  0x19   : > { %p2978_p2 = pneg %p2977_p1 }
  0x1b   : > { %p2983_p4 = pnand %p2981_p3, %p2978_p2 }
  0x1d   : > { %2986 = shalt.err (!%p2983_p4)
}
  0x1e   : > { %s2987_s8 = scalar_lea.vmem %s129_s26, 18432  ;;  %p2995_p9 = scmp.lt.s32.totalorder %s129_s26, %s129_s26 }
  0x1f   : > { %p2988_p7 = scmp.ne.s32.totalorder %s129_s26, %s2987_s8  ;;  %p2996_p6 = scmp.lt.s32.totalorder %s2987_s8, %s2987_s8 }
  0x21   : > { %p2990_p8 = pnand %p2988_p7, %p2976_p0  ;;  %p2997_p5 = por %p2996_p6, %p2995_p9 }
  0x23   : > { %p2991_p11 = pneg %p2990_p8 }
  0x25   : > { %p2998_p10 = pnand %p2997_p5, %p2991_p11 }
  0x27   : > { %3001 = shalt.err (!%p2998_p10)
}
  0x28   : > { %s3071_s9 = smov 2048   ;;  %s3072_s10 = smov 128  }
  0x29   : > { %2928 = dma.hbm_to_vmem [thread:$0]  (!%p3154_p12), %s3535_s1, 18432, %s129_s26, [#allocation3], %s3071_s9, %s3071_s9, %s3072_s10  }
  0x2a   : > { %p3545_p13 = scmp.ne.s32.totalorder %s3543_s24, 0 }
  0x2b   : > { %p3546_p1 = scmp.eq.s32.totalorder (!%p3545_p13), %s3118_s16, 0 }
  0x2c   : > { %155 = sbr.rel (%p3545_p13) target bundleno = 387 (0x183), region = 32 }
  0x33   : > { %3047 = dma.done.wait (%p3546_p1), [#allocation3], 18432   ;;  %p3547_p0 = pmov %p3546_p1 }
  0x34   : > { %p179_p5 = scmp.lt.s32.totalorder %s3118_s16, 1  ;;  %v3073_v0 = vmov 0.0   ;;  %v238_v1 = vld [vmem:[#allocation2 + $0x188] sm:$0xff]  ;;  %v240_v3 = vld [vmem:[#allocation2 + $0x198] sm:$0xff]  ;;  %v237_v6 = vld [vmem:[#allocation2 + $0x180] sm:$0xff]  ;;  %vm292_vm0 = vcmask 1041408  }
  0x35   : > { %3049 = vsyncadd (%p3547_p0), [#allocation3], 4294948864  ;;  %405 = vmatprep.mubr.f32.mxu0 %v3073_v0  ;;  %482 = vmatprep.mubr.f32.mxu1 %v3073_v0  ;;  %v254_v2 = vld [vmem:[#allocation2 + $0x208] sm:$0xff]  ;;  %v256_v5 = vld [vmem:[#allocation2 + $0x218] sm:$0xff]  ;;  %vm285_vm1 = vcmask 146432   ;;  %s176_s29 = sand.u32 1, %s3060_s13  }
  0x36   : > { %s180_s19 = scalar_select %p179_p5, %s3118_s16, 1  ;;  %v2758_v4 = vpack.c.bf16 %v254_v2, %v238_v1  ;;  %v253_v7 = vld [vmem:[#allocation2 + $0x200] sm:$0xff]  ;;  %v2762_v8 = vpack.c.bf16 %v256_v5, %v240_v3  ;;  %v239_v10 = vld [vmem:[#allocation2 + $0x190] sm:$0xff]  ;;  %v270_v12 = vld [vmem:[#allocation2 + $0x288] sm:$0x3] }
  0x37   : > { %v2760_v9 = vpack.c.bf16 %v253_v7, %v237_v6  ;;  %v255_v11 = vld [vmem:[#allocation2 + $0x210] sm:$0xff]  ;;  %v272_v14 = vld [vmem:[#allocation2 + $0x298] sm:$0x3]  ;;  %v269_v15 = vld [vmem:[#allocation2 + $0x280] sm:$0x3]  ;;  %s2654_s30 = sshll.u32 %s176_s29, 8 }
  0x38   : > { %s2918_s20 = smul.u32 24, %s180_s19  ;;  %2759 = vmatprep.subr.bf16.mxu0 %v2758_v4  ;;  %v2764_v13 = vpack.c.bf16 %v255_v11, %v239_v10  ;;  %2763 = vmatprep.subr.bf16.mxu1 %v2762_v8  ;;  %v271_v16 = vld [vmem:[#allocation2 + $0x290] sm:$0x3]  ;;  %v242_v18 = vld [vmem:[#allocation2 + $0x1a8] sm:$0xff]  ;;  %v244_v20 = vld [vmem:[#allocation2 + $0x1b8] sm:$0xff]  ;;  %s3421_s4 = scalar_lea.vmem [#allocation5], %s2654_s30 }
  0x39   : > { %2761 = vmatpush1.bf16.msra.mxu0 %v2760_v9  ;;  %v258_v19 = vld [vmem:[#allocation2 + $0x228] sm:$0xff]  ;;  %v260_v21 = vld [vmem:[#allocation2 + $0x238] sm:$0xff]  ;;  %v241_v22 = vld [vmem:[#allocation2 + $0x1a0] sm:$0xff]  ;;  %s2757_s7 = sshll.u32 %s3118_s16, 12  ;;  %s2574_s8 = sshll.u32 %s3421_s4, 4  ;;  %s3485_s8 = int_to_ptr.vmem [resolvable:$true] %s2574_s8 }
  0x3a   : > { %s3187_s26 = scalar_lea.vmem %s3534_s0, %s2918_s20  ;;  %2765 = vmatpush1.bf16.msra.mxu1 %v2764_v13  ;;  %2656 = vmatprep.subr.msk.mxu0 %vm292_vm0, %v270_v12  ;;  %v2766_v23 = vpack.c.bf16 %v258_v19, %v242_v18  ;;  %v257_v24 = vld [vmem:[#allocation2 + $0x220] sm:$0xff]  ;;  %v243_v25 = vld [vmem:[#allocation2 + $0x1b0] sm:$0xff]  ;;  %v2770_v27 = vpack.c.bf16 %v260_v21, %v244_v20  ;;  %v274_v31 = vld [vmem:[#allocation2 + $0x2a8] sm:$0x3]  ;;  %s3483_s16 = scalar_lea.hbm %s3537_s3, %s2757_s7 }
  0x3b   : > { %v3190_v17 = vld [vmem:[%s3187_s26 + $0x1] sm:$0xff]  ;;  %2660 = vmatprep.subr.msk.mxu1 %vm292_vm0, %v272_v14  ;;  %v2768_v28 = vpack.c.bf16 %v257_v24, %v241_v22  ;;  %v3199_v30 = vld [vmem:[%s3187_s26 + $0x9] sm:$0xff]  ;;  %v246_v34 = vld [vmem:[#allocation2 + $0x1c8] sm:$0xff]  ;;  %s3493_s11 = scalar_lea.sflag [#allocation4], %s176_s29  ;;  %s3002_s17 = scalar_lea.vmem %s3485_s8, 4096 }
  0x3c   : > { %v259_v26 = vld [vmem:[#allocation2 + $0x230] sm:$0xff]  ;;  %v276_v32 = vld [vmem:[#allocation2 + $0x2b8] sm:$0x3]  ;;  %v273_v33 = vld [vmem:[#allocation2 + $0x2a0] sm:$0x3]  ;;  %p3003_p6 = scmp.ne.s32.totalorder %s3485_s8, %s3002_s17  ;;  %p3548_p9 = scmp.ne.s32.totalorder %s3541_s22, 0 }
  0x3d   : > { %2657 = vmatpush1.msk.msra.mxu0 %vm292_vm0, %v269_v15  ;;  %v2772_v29 = vpack.c.bf16 %v259_v26, %v243_v25  ;;  %v262_v35 = vld [vmem:[#allocation2 + $0x248] sm:$0xff]  ;;  %v248_v36 = vld [vmem:[#allocation2 + $0x1d8] sm:$0xff]  ;;  %v245_v38 = vld [vmem:[#allocation2 + $0x1c0] sm:$0xff]  ;;  %s3074_s19 = smov [#allocation5]  }
  0x3e   : > { %2661 = vmatpush1.msk.msra.mxu1 %vm292_vm0, %v271_v16  ;;  %2658 = vmatmul.mubr.msk.f32.vlgmr.msra.gmra.mrb[0].mxu0 %vm285_vm1, %v3190_v17  ;;  %v264_v37 = vld [vmem:[#allocation2 + $0x258] sm:$0xff]  ;;  %v261_v39 = vld [vmem:[#allocation2 + $0x240] sm:$0xff]  ;;  %v275_v40 = vld [vmem:[#allocation2 + $0x2b0] sm:$0x3]  ;;  %v2774_v43 = vpack.c.bf16 %v262_v35, %v246_v34  ;;  %p3004_p10 = pnand %p3003_p6, %p3548_p9  ;;  %s3006_s20 = sshll.u32 %s3074_s19, 4  ;;  %s3007_s20 = int_to_ptr.vmem [resolvable:$false] %s3006_s20 }
  0x3f   : > { %2662 = vmatmul.mubr.msk.f32.vlgmr.msra.gmra.mrb[0].mxu1 %vm285_vm1, %v3190_v17  ;;  %2767 = vmatprep.subr.bf16.mxu0 %v2766_v23  ;;  %v247_v41 = vld [vmem:[#allocation2 + $0x1d0] sm:$0xff]  ;;  %v2778_v44 = vpack.c.bf16 %v264_v37, %v248_v36  ;;  %v2776_v45 = vpack.c.bf16 %v261_v39, %v245_v38  ;;  %v278_v47 = vld [vmem:[#allocation2 + $0x2c8] sm:$0x3]  ;;  %v280_v48 = vld [vmem:[#allocation2 + $0x2d8] sm:$0x3]  ;;  %s3008_s24 = scalar_lea.vmem %s3007_s20, 8192  ;;  %p3009_p2 = scmp.lt.s32.totalorder %s3485_s8, %s3007_s20 }
  0x40   : > { %2771 = vmatprep.subr.bf16.mxu1 %v2770_v27  ;;  %2769 = vmatpush1.bf16.msra.mxu0 %v2768_v28  ;;  %v263_v42 = vld [vmem:[#allocation2 + $0x250] sm:$0xff]  ;;  %v277_v49 = vld [vmem:[#allocation2 + $0x2c0] sm:$0x3]  ;;  %v250_v50 = vld [vmem:[#allocation2 + $0x1e8] sm:$0xff]  ;;  %p3005_p12 = pneg %p3004_p10  ;;  %p3010_p3 = scmp.lt.s32.totalorder %s3008_s24, %s3002_s17 }
  0x41   : > { %2773 = vmatpush1.bf16.msra.mxu1 %v2772_v29  ;;  %411 = vmatprep.mubr.f32.mxu0 %v3073_v0  ;;  %v2780_v46 = vpack.c.bf16 %v263_v42, %v247_v41  ;;  %v266_v51 = vld [vmem:[#allocation2 + $0x268] sm:$0xff]  ;;  %v252_v52 = vld [vmem:[#allocation2 + $0x1f8] sm:$0xff]  ;;  %v249_v54 = vld [vmem:[#allocation2 + $0x1e0] sm:$0xff] }
  0x42   : > { %488 = vmatprep.mubr.f32.mxu1 %v3073_v0  ;;  %2659 = vmatmul.mubr.msk.f32.gmra.mrb[2].mxu0 %vm285_vm1, %v3199_v30  ;;  %v268_v53 = vld [vmem:[#allocation2 + $0x278] sm:$0xff]  ;;  %v265_v55 = vld [vmem:[#allocation2 + $0x260] sm:$0xff]  ;;  %v279_v56 = vld [vmem:[#allocation2 + $0x2d0] sm:$0x3]  ;;  %v2782_v59 = vpack.c.bf16 %v266_v51, %v250_v50  ;;  %p3011_p4 = por %p3010_p3, %p3009_p2 }
  0x43   : > { %2663 = vmatmul.mubr.msk.f32.gmra.mrb[2].mxu1 %vm285_vm1, %v3199_v30  ;;  %2664 = vmatprep.subr.msk.mxu0 %vm292_vm0, %v274_v31  ;;  %v251_v57 = vld [vmem:[#allocation2 + $0x1f0] sm:$0xff]  ;;  %v2786_v60 = vpack.c.bf16 %v268_v53, %v252_v52  ;;  %v2784_v61 = vpack.c.bf16 %v265_v55, %v249_v54  ;;  %v282_v63 = vld [vmem:[#allocation2 + $0x2e8] sm:$0x3]  ;;  %v284_v1 = vld [vmem:[#allocation2 + $0x2f8] sm:$0x3] }
  0x44   : > { %2668 = vmatprep.subr.msk.mxu1 %vm292_vm0, %v276_v32  ;;  %2665 = vmatpush1.msk.msra.mxu0 %vm292_vm0, %v273_v33  ;;  %v267_v58 = vld [vmem:[#allocation2 + $0x270] sm:$0xff]  ;;  %v281_v2 = vld [vmem:[#allocation2 + $0x2e0] sm:$0x3]  ;;  %v187_v3 = vld [vmem:[#allocation2 + $0x8] sm:$0xff]  ;;  %p3012_p7 = pnand %p3011_p4, %p3005_p12 }
  0x45   : > { %2669 = vmatpush1.msk.msra.mxu1 %vm292_vm0, %v275_v40  ;;  %559 = vmatprep.mubr.f32.mxu0 %v3073_v0  ;;  %v2788_v62 = vpack.c.bf16 %v267_v58, %v251_v57  ;;  %v203_v4 = vld [vmem:[#allocation2 + $0x88] sm:$0xff]  ;;  %v189_v5 = vld [vmem:[#allocation2 + $0x18] sm:$0xff]  ;;  %v186_v7 = vld [vmem:[#allocation2] sm:$0xff] }
  0x46   : > { %636 = vmatprep.mubr.f32.mxu1 %v3073_v0  ;;  %2666 = vmatmul.mubr.msk.f32.vlgmr.msra.gmra.mrb[4].mxu0 %vm285_vm1, %v3190_v17  ;;  %v205_v6 = vld [vmem:[#allocation2 + $0x98] sm:$0xff]  ;;  %v202_v8 = vld [vmem:[#allocation2 + $0x80] sm:$0xff]  ;;  %v283_v9 = vld [vmem:[#allocation2 + $0x2f0] sm:$0x3]  ;;  %v2790_v12 = vpack.c.bf16 %v203_v4, %v187_v3 }
  0x47   : > { %2670 = vmatmul.mubr.msk.f32.vlgmr.msra.gmra.mrb[4].mxu1 %vm285_vm1, %v3190_v17  ;;  %2775 = vmatprep.subr.bf16.mxu0 %v2774_v43  ;;  %v188_v10 = vld [vmem:[#allocation2 + $0x10] sm:$0xff]  ;;  %v2794_v13 = vpack.c.bf16 %v205_v6, %v189_v5  ;;  %v2792_v14 = vpack.c.bf16 %v202_v8, %v186_v7  ;;  %v219_v16 = vld [vmem:[#allocation2 + $0x108] sm:$0x3]  ;;  %v221_v18 = vld [vmem:[#allocation2 + $0x118] sm:$0x3] }
  0x48   : > { %2779 = vmatprep.subr.bf16.mxu1 %v2778_v44  ;;  %2777 = vmatpush1.bf16.msra.mxu0 %v2776_v45  ;;  %v204_v11 = vld [vmem:[#allocation2 + $0x90] sm:$0xff]  ;;  %v218_v19 = vld [vmem:[#allocation2 + $0x100] sm:$0x3]  ;;  %v191_v20 = vld [vmem:[#allocation2 + $0x28] sm:$0xff] }
  0x49   : > { %2781 = vmatpush1.bf16.msra.mxu1 %v2780_v46  ;;  %565 = vmatprep.mubr.f32.mxu0 %v3073_v0  ;;  %v2796_v15 = vpack.c.bf16 %v204_v11, %v188_v10  ;;  %v207_v21 = vld [vmem:[#allocation2 + $0xa8] sm:$0xff]  ;;  %v193_v22 = vld [vmem:[#allocation2 + $0x38] sm:$0xff]  ;;  %v190_v24 = vld [vmem:[#allocation2 + $0x20] sm:$0xff] }
  0x4a   : > { %642 = vmatprep.mubr.f32.mxu1 %v3073_v0  ;;  %2667 = vmatmul.mubr.msk.f32.gmra.mrb[6].mxu0 %vm285_vm1, %v3199_v30  ;;  %v209_v23 = vld [vmem:[#allocation2 + $0xb8] sm:$0xff]  ;;  %v206_v25 = vld [vmem:[#allocation2 + $0xa0] sm:$0xff]  ;;  %v192_v26 = vld [vmem:[#allocation2 + $0x30] sm:$0xff]  ;;  %v2798_v29 = vpack.c.bf16 %v207_v21, %v191_v20 }
  0x4b   : > { %2671 = vmatmul.mubr.msk.f32.gmra.mrb[6].mxu1 %vm285_vm1, %v3199_v30  ;;  %2672 = vmatprep.subr.msk.mxu0 %vm292_vm0, %v278_v47  ;;  %v208_v27 = vld [vmem:[#allocation2 + $0xb0] sm:$0xff]  ;;  %v2802_v31 = vpack.c.bf16 %v209_v23, %v193_v22  ;;  %v2800_v32 = vpack.c.bf16 %v206_v25, %v190_v24  ;;  %v223_v34 = vld [vmem:[#allocation2 + $0x128] sm:$0x3]  ;;  %v225_v35 = vld [vmem:[#allocation2 + $0x138] sm:$0x3] }
  0x4c   : > { %2676 = vmatprep.subr.msk.mxu1 %vm292_vm0, %v280_v48  ;;  %2673 = vmatpush1.msk.msra.mxu0 %vm292_vm0, %v277_v49  ;;  %v3259_v28 = vld [vmem:[%s3187_s26] sm:$0xff]  ;;  %v2804_v33 = vpack.c.bf16 %v208_v27, %v192_v26  ;;  %v222_v36 = vld [vmem:[#allocation2 + $0x120] sm:$0x3]  ;;  %v195_v37 = vld [vmem:[#allocation2 + $0x48] sm:$0xff] }
  0x4d   : > { %2677 = vmatpush1.msk.msra.mxu1 %vm292_vm0, %v279_v56  ;;  %713 = vmatprep.mubr.f32.mxu0 %v3073_v0  ;;  %v211_v38 = vld [vmem:[#allocation2 + $0xc8] sm:$0xff]  ;;  %v197_v39 = vld [vmem:[#allocation2 + $0x58] sm:$0xff]  ;;  %v194_v41 = vld [vmem:[#allocation2 + $0x40] sm:$0xff] }
  0x4e   : > { %790 = vmatprep.mubr.f32.mxu1 %v3073_v0  ;;  %2674 = vmatmul.mubr.msk.f32.vlgmr.msra.gmra.mrb[8].mxu0 %vm285_vm1, %v3190_v17  ;;  %v213_v40 = vld [vmem:[#allocation2 + $0xd8] sm:$0xff]  ;;  %v210_v42 = vld [vmem:[#allocation2 + $0xc0] sm:$0xff]  ;;  %v224_v43 = vld [vmem:[#allocation2 + $0x130] sm:$0x3]  ;;  %v2806_v46 = vpack.c.bf16 %v211_v38, %v195_v37 }
  0x4f   : > { %2678 = vmatmul.mubr.msk.f32.vlgmr.msra.gmra.mrb[8].mxu1 %vm285_vm1, %v3190_v17  ;;  %2783 = vmatprep.subr.bf16.mxu0 %v2782_v59  ;;  %v196_v44 = vld [vmem:[#allocation2 + $0x50] sm:$0xff]  ;;  %v2810_v47 = vpack.c.bf16 %v213_v40, %v197_v39  ;;  %v2808_v48 = vpack.c.bf16 %v210_v42, %v194_v41  ;;  %v227_v50 = vld [vmem:[#allocation2 + $0x148] sm:$0x3]  ;;  %v229_v51 = vld [vmem:[#allocation2 + $0x158] sm:$0x3] }
  0x50   : > { %2787 = vmatprep.subr.bf16.mxu1 %v2786_v60  ;;  %2785 = vmatpush1.bf16.msra.mxu0 %v2784_v61  ;;  %v212_v45 = vld [vmem:[#allocation2 + $0xd0] sm:$0xff]  ;;  %v226_v52 = vld [vmem:[#allocation2 + $0x140] sm:$0x3]  ;;  %v199_v53 = vld [vmem:[#allocation2 + $0x68] sm:$0xff] }
  0x51   : > { %2789 = vmatpush1.bf16.msra.mxu1 %v2788_v62  ;;  %719 = vmatprep.mubr.f32.mxu0 %v3073_v0  ;;  %v2812_v49 = vpack.c.bf16 %v212_v45, %v196_v44  ;;  %v215_v54 = vld [vmem:[#allocation2 + $0xe8] sm:$0xff]  ;;  %v201_v55 = vld [vmem:[#allocation2 + $0x78] sm:$0xff]  ;;  %v198_v57 = vld [vmem:[#allocation2 + $0x60] sm:$0xff] }
  0x52   : > { %796 = vmatprep.mubr.f32.mxu1 %v3073_v0  ;;  %2675 = vmatmul.mubr.msk.f32.gmra.mrb[10].mxu0 %vm285_vm1, %v3199_v30  ;;  %v217_v56 = vld [vmem:[#allocation2 + $0xf8] sm:$0xff]  ;;  %v214_v58 = vld [vmem:[#allocation2 + $0xe0] sm:$0xff]  ;;  %v228_v59 = vld [vmem:[#allocation2 + $0x150] sm:$0x3]  ;;  %v2814_v62 = vpack.c.bf16 %v215_v54, %v199_v53 }
  0x53   : > { %2679 = vmatmul.mubr.msk.f32.gmra.mrb[10].mxu1 %vm285_vm1, %v3199_v30  ;;  %2680 = vmatprep.subr.msk.mxu0 %vm292_vm0, %v282_v63  ;;  %v200_v60 = vld [vmem:[#allocation2 + $0x70] sm:$0xff]  ;;  %v2818_v63 = vpack.c.bf16 %v217_v56, %v201_v55  ;;  %v231_v3 = vld [vmem:[#allocation2 + $0x168] sm:$0x3]  ;;  %v233_v4 = vld [vmem:[#allocation2 + $0x178] sm:$0x3] }
  0x54   : > { %2684 = vmatprep.subr.msk.mxu1 %vm292_vm0, %v284_v1  ;;  %2681 = vmatpush1.msk.msra.mxu0 %vm292_vm0, %v281_v2  ;;  %v216_v61 = vld [vmem:[#allocation2 + $0xf0] sm:$0xff]  ;;  %v2816_v1 = vpack.c.bf16 %v214_v58, %v198_v57  ;;  %v230_v5 = vld [vmem:[#allocation2 + $0x160] sm:$0x3]  ;;  %v1631_v6 = vld [vmem:[#allocation2 + $0x308] sm:$0xff] }
  0x55   : > { %2685 = vmatpush1.msk.msra.mxu1 %vm292_vm0, %v283_v9  ;;  %867 = vmatprep.mubr.f32.mxu0 %v3073_v0  ;;  %v2820_v2 = vpack.c.bf16 %v216_v61, %v200_v60  ;;  %v1647_v7 = vld [vmem:[#allocation2 + $0x388] sm:$0xff]  ;;  %v1633_v8 = vld [vmem:[#allocation2 + $0x318] sm:$0xff]  ;;  %v1630_v10 = vld [vmem:[#allocation2 + $0x300] sm:$0xff] }
  0x56   : > { %944 = vmatprep.mubr.f32.mxu1 %v3073_v0  ;;  %2682 = vmatmul.mubr.msk.f32.vlgmr.msra.gmra.mrb[12].mxu0 %vm285_vm1, %v3190_v17  ;;  %v1649_v9 = vld [vmem:[#allocation2 + $0x398] sm:$0xff]  ;;  %v1646_v11 = vld [vmem:[#allocation2 + $0x380] sm:$0xff]  ;;  %v1663_v20 = vld [vmem:[#allocation2 + $0x408] sm:$0x3] }
  0x57   : > { %2686 = vmatmul.mubr.msk.f32.vlgmr.msra.gmra.mrb[12].mxu1 %vm285_vm1, %v3190_v17  ;;  %2791 = vmatprep.subr.bf16.mxu0 %v2790_v12  ;;  %v220_v17 = vld [vmem:[#allocation2 + $0x110] sm:$0x3]  ;;  %v1665_v21 = vld [vmem:[#allocation2 + $0x418] sm:$0x3]  ;;  %v1662_v22 = vld [vmem:[#allocation2 + $0x400] sm:$0x3] }
  0x58   : > { %2795 = vmatprep.subr.bf16.mxu1 %v2794_v13  ;;  %2793 = vmatpush1.bf16.msra.mxu0 %v2792_v14  ;;  %v232_v12 = vld [vmem:[#allocation2 + $0x170] sm:$0x3]  ;;  %v1635_v23 = vld [vmem:[#allocation2 + $0x328] sm:$0xff]  ;;  %v1637_v25 = vld [vmem:[#allocation2 + $0x338] sm:$0xff] }
  0x59   : > { %2797 = vmatpush1.bf16.msra.mxu1 %v2796_v15  ;;  %873 = vmatprep.mubr.f32.mxu0 %v3073_v0  ;;  %v1632_v13 = vld [vmem:[#allocation2 + $0x310] sm:$0xff]  ;;  %v2822_v15 = vpack.c.bf16 %v1647_v7, %v1631_v6  ;;  %v1651_v24 = vld [vmem:[#allocation2 + $0x3a8] sm:$0xff]  ;;  %v1634_v26 = vld [vmem:[#allocation2 + $0x320] sm:$0xff] }
  0x5a   : > { %950 = vmatprep.mubr.f32.mxu1 %v3073_v0  ;;  %2683 = vmatmul.mubr.msk.f32.gmra.mrb[14].mxu0 %vm285_vm1, %v3199_v30  ;;  %v1648_v14 = vld [vmem:[#allocation2 + $0x390] sm:$0xff]  ;;  %v1650_v27 = vld [vmem:[#allocation2 + $0x3a0] sm:$0xff]  ;;  %v1667_v37 = vld [vmem:[#allocation2 + $0x428] sm:$0x3] }
  0x5b   : > { %2687 = vmatmul.mubr.msk.f32.gmra.mrb[14].mxu1 %vm285_vm1, %v3199_v30  ;;  %2688 = vmatprep.subr.msk.mxu0 %vm292_vm0, %v219_v16  ;;  %v3269_v30 = vld [vmem:[%s3187_s26 + $0x8] sm:$0xff]  ;;  %v2826_v16 = vpack.c.bf16 %v1649_v9, %v1633_v8  ;;  %v1666_v39 = vld [vmem:[#allocation2 + $0x420] sm:$0x3]  ;;  %v1639_v40 = vld [vmem:[#allocation2 + $0x348] sm:$0xff] }
  0x5c   : > { %2692 = vmatprep.subr.msk.mxu1 %vm292_vm0, %v221_v18  ;;  %2689 = vmatpush1.msk.msra.mxu0 %vm292_vm0, %v218_v19  ;;  %v2824_v18 = vpack.c.bf16 %v1646_v11, %v1630_v10  ;;  %v2828_v19 = vpack.c.bf16 %v1648_v14, %v1632_v13  ;;  %v1669_v38 = vld [vmem:[#allocation2 + $0x438] sm:$0x3]  ;;  %v1655_v41 = vld [vmem:[#allocation2 + $0x3c8] sm:$0xff]  ;;  %v1638_v44 = vld [vmem:[#allocation2 + $0x340] sm:$0xff]  ;;  %v2384_v10 = vlaneseq }
  0x5d   : > { %2693 = vmatpush1.msk.msra.mxu1 %vm292_vm0, %v220_v17  ;;  %1075 = vmatprep.mubr.f32.mxu0 %v3073_v0  ;;  %v1653_v17 = vld [vmem:[#allocation2 + $0x3b8] sm:$0xff]  ;;  %v1654_v45 = vld [vmem:[#allocation2 + $0x3c0] sm:$0xff]  ;;  %v1671_v53 = vld [vmem:[#allocation2 + $0x448] sm:$0x3] }
  0x5e   : > { %1152 = vmatprep.mubr.f32.mxu1 %v3073_v0  ;;  %2690 = vmatmul.mubr.msk.f32.vlgmr.msra.gmra.mrb[0].mxu0 %vm285_vm1, %v3259_v28  ;;  %v1641_v42 = vld [vmem:[#allocation2 + $0x358] sm:$0xff]  ;;  %v1670_v55 = vld [vmem:[#allocation2 + $0x440] sm:$0x3]  ;;  %v1643_v56 = vld [vmem:[#allocation2 + $0x368] sm:$0xff]  ;;  %v3397_v11 = vshrl.u32 %v2384_v10, 7 }
  0x5f   : > { %2694 = vmatmul.mubr.msk.f32.vlgmr.msra.gmra.mrb[0].mxu1 %vm285_vm1, %v3259_v28  ;;  %2799 = vmatprep.subr.bf16.mxu0 %v2798_v29  ;;  %v1636_v29 = vld [vmem:[#allocation2 + $0x330] sm:$0xff]  ;;  %v1673_v54 = vld [vmem:[#allocation2 + $0x458] sm:$0x3]  ;;  %v1659_v57 = vld [vmem:[#allocation2 + $0x3e8] sm:$0xff] }
  0x60   : > { %2803 = vmatprep.subr.bf16.mxu1 %v2802_v31  ;;  %2801 = vmatpush1.bf16.msra.mxu0 %v2800_v32  ;;  %v1652_v31 = vld [vmem:[#allocation2 + $0x3b0] sm:$0xff]  ;;  %v1645_v58 = vld [vmem:[#allocation2 + $0x378] sm:$0xff]  ;;  %v1642_v60 = vld [vmem:[#allocation2 + $0x360] sm:$0xff]  ;;  %v2394_v14 = vsub.s32 2, %v3397_v11 }
  0x61   : > { %2805 = vmatpush1.bf16.msra.mxu1 %v2804_v33  ;;  %1081 = vmatprep.mubr.f32.mxu0 %v3073_v0  ;;  %v3329_v32 = vld [vmem:[%s3187_s26 + $0x2] sm:$0xff]  ;;  %v2830_v33 = vpack.c.bf16 %v1651_v24, %v1635_v23  ;;  %v1658_v61 = vld [vmem:[#allocation2 + $0x3e0] sm:$0xff]  ;;  %v1675_v6 = vld [vmem:[#allocation2 + $0x468] sm:$0x3] }
  0x62   : > { %1158 = vmatprep.mubr.f32.mxu1 %v3073_v0  ;;  %2691 = vmatmul.mubr.msk.f32.gmra.mrb[2].mxu0 %vm285_vm1, %v3269_v30  ;;  %v1677_v7 = vld [vmem:[#allocation2 + $0x478] sm:$0x3]  ;;  %v1674_v8 = vld [vmem:[#allocation2 + $0x460] sm:$0x3]  ;;  %v1676_v9 = vld [vmem:[#allocation2 + $0x470] sm:$0x3] }
  0x63   : > { %2695 = vmatmul.mubr.msk.f32.gmra.mrb[2].mxu1 %vm285_vm1, %v3269_v30  ;;  %2696 = vmatprep.subr.msk.mxu0 %vm292_vm0, %v223_v34  ;;  %v2834_v34 = vpack.c.bf16 %v1653_v17, %v1637_v25  ;;  %v2380_v13 = vld [vmem:[%s3536_s2] sm:$0xff]  ;;  %v2402_v25 = vsub.s32 4, %v3397_v11 }
  0x64   : > { %2700 = vmatprep.subr.msk.mxu1 %vm292_vm0, %v225_v35  ;;  %2697 = vmatpush1.msk.msra.mxu0 %vm292_vm0, %v222_v36  ;;  %v2832_v35 = vpack.c.bf16 %v1650_v27, %v1634_v26  ;;  %v2836_v36 = vpack.c.bf16 %v1652_v31, %v1636_v29  ;;  %v2406_v29 = vsub.s32 5, %v3397_v11 }
  0x65   : > { %2701 = vmatpush1.msk.msra.mxu1 %vm292_vm0, %v224_v43  ;;  %1229 = vmatprep.mubr.f32.mxu0 %v3073_v0  ;;  %v1657_v43 = vld [vmem:[#allocation2 + $0x3d8] sm:$0xff] }
  0x66   : > { %1306 = vmatprep.mubr.f32.mxu1 %v3073_v0  ;;  %2698 = vmatmul.mubr.msk.f32.vlgmr.msra.gmra.mrb[4].mxu0 %vm285_vm1, %v3259_v28 }
  0x67   : > { %2702 = vmatmul.mubr.msk.f32.vlgmr.msra.gmra.mrb[4].mxu1 %vm285_vm1, %v3259_v28  ;;  %2807 = vmatprep.subr.bf16.mxu0 %v2806_v46  ;;  %v1668_v46 = vld [vmem:[#allocation2 + $0x430] sm:$0x3] }
  0x68   : > { %2811 = vmatprep.subr.bf16.mxu1 %v2810_v47  ;;  %2809 = vmatpush1.bf16.msra.mxu0 %v2808_v48  ;;  %v1640_v47 = vld [vmem:[#allocation2 + $0x350] sm:$0xff] }
  0x69   : > { %2813 = vmatpush1.bf16.msra.mxu1 %v2812_v49  ;;  %1235 = vmatprep.mubr.f32.mxu0 %v3073_v0  ;;  %v1656_v48 = vld [vmem:[#allocation2 + $0x3d0] sm:$0xff]  ;;  %v2838_v49 = vpack.c.bf16 %v1655_v41, %v1639_v40  ;;  %v2403_v40 = vrot.slane %v2380_v13, %v2402_v25 }
  0x6a   : > { %1312 = vmatprep.mubr.f32.mxu1 %v3073_v0  ;;  %2699 = vmatmul.mubr.msk.f32.gmra.mrb[6].mxu0 %vm285_vm1, %v3269_v30 }
  0x6b   : > { %2703 = vmatmul.mubr.msk.f32.gmra.mrb[6].mxu1 %vm285_vm1, %v3269_v30  ;;  %2704 = vmatprep.subr.msk.mxu0 %vm292_vm0, %v227_v50  ;;  %v2842_v50 = vpack.c.bf16 %v1657_v43, %v1641_v42 }
  0x6c   : > { %2708 = vmatprep.subr.msk.mxu1 %vm292_vm0, %v229_v51  ;;  %2705 = vmatpush1.msk.msra.mxu0 %vm292_vm0, %v226_v52  ;;  %v2840_v51 = vpack.c.bf16 %v1654_v45, %v1638_v44  ;;  %v2844_v52 = vpack.c.bf16 %v1656_v48, %v1640_v47  ;;  %v2407_v45 = vrot.slane %v2380_v13, %v2406_v29 }
  0x6d   : > { %2709 = vmatpush1.msk.msra.mxu1 %vm292_vm0, %v228_v59  ;;  %1383 = vmatprep.mubr.f32.mxu0 %v3073_v0  ;;  %v1661_v59 = vld [vmem:[#allocation2 + $0x3f8] sm:$0xff] }
  0x6e   : > { %1460 = vmatprep.mubr.f32.mxu1 %v3073_v0  ;;  %2706 = vmatmul.mubr.msk.f32.vlgmr.msra.gmra.mrb[8].mxu0 %vm285_vm1, %v3259_v28 }
  0x6f   : > { %2710 = vmatmul.mubr.msk.f32.vlgmr.msra.gmra.mrb[8].mxu1 %vm285_vm1, %v3259_v28  ;;  %2815 = vmatprep.subr.bf16.mxu0 %v2814_v62  ;;  %v1672_v62 = vld [vmem:[#allocation2 + $0x450] sm:$0x3] }
  0x70   : > { %2819 = vmatprep.subr.bf16.mxu1 %v2818_v63  ;;  %2817 = vmatpush1.bf16.msra.mxu0 %v2816_v1  ;;  %v1644_v63 = vld [vmem:[#allocation2 + $0x370] sm:$0xff] }
  0x71   : > { %2821 = vmatpush1.bf16.msra.mxu1 %v2820_v2  ;;  %1389 = vmatprep.mubr.f32.mxu0 %v3073_v0  ;;  %v1660_v1 = vld [vmem:[#allocation2 + $0x3f0] sm:$0xff]  ;;  %v2846_v2 = vpack.c.bf16 %v1659_v57, %v1643_v56 }
  0x72   : > { %1466 = vmatprep.mubr.f32.mxu1 %v3073_v0  ;;  %2707 = vmatmul.mubr.msk.f32.gmra.mrb[10].mxu0 %vm285_vm1, %v3269_v30 }
  0x73   : > { %2711 = vmatmul.mubr.msk.f32.gmra.mrb[10].mxu1 %vm285_vm1, %v3269_v30  ;;  %2712 = vmatprep.subr.msk.mxu0 %vm292_vm0, %v231_v3  ;;  %v2850_v3 = vpack.c.bf16 %v1661_v59, %v1645_v58  ;;  %v2381_v59 = vld [vmem:[%s3536_s2 + $0x8] sm:$0xff] }
  0x74   : > { %2716 = vmatprep.subr.msk.mxu1 %vm292_vm0, %v233_v4  ;;  %2713 = vmatpush1.msk.msra.mxu0 %vm292_vm0, %v230_v5  ;;  %v2848_v4 = vpack.c.bf16 %v1658_v61, %v1642_v60  ;;  %v2852_v5 = vpack.c.bf16 %v1660_v1, %v1644_v63  ;;  %v2427_v10 = vrot.slane %v2381_v59, %v2394_v14 }
  0x75   : > { %2717 = vmatpush1.msk.msra.mxu1 %vm292_vm0, %v232_v12  ;;  %1537 = vmatprep.mubr.f32.mxu0 %v3073_v0  ;;  %v2386_v12 = vsub.s32 0, %v3397_v11 }
  0x76   : > { %1614 = vmatprep.mubr.f32.mxu1 %v3073_v0  ;;  %2714 = vmatmul.mubr.msk.f32.vlgmr.msra.gmra.mrb[12].mxu0 %vm285_vm1, %v3259_v28 }
  0x77   : > { %2718 = vmatmul.mubr.msk.f32.vlgmr.msra.gmra.mrb[12].mxu1 %vm285_vm1, %v3259_v28  ;;  %2823 = vmatprep.subr.bf16.mxu0 %v2822_v15  ;;  %v1664_v28 = vld [vmem:[#allocation2 + $0x410] sm:$0x3]  ;;  %v2390_v15 = vsub.s32 1, %v3397_v11 }
  0x78   : > { %2827 = vmatprep.subr.bf16.mxu1 %v2826_v16  ;;  %2825 = vmatpush1.bf16.msra.mxu0 %v2824_v18  ;;  %v2387_v16 = vrot.slane %v2380_v13, %v2386_v12  ;;  %v2395_v18 = vrot.slane %v2380_v13, %v2394_v14 }
  0x79   : > { %2829 = vmatpush1.bf16.msra.mxu1 %v2828_v19  ;;  %1543 = vmatprep.mubr.f32.mxu0 %v3073_v0  ;;  %v2391_v19 = vrot.slane %v2380_v13, %v2390_v15 }
  0x7a   : > { %1620 = vmatprep.mubr.f32.mxu1 %v3073_v0  ;;  %2715 = vmatmul.mubr.msk.f32.gmra.mrb[14].mxu0 %vm285_vm1, %v3269_v30 }
  0x7b   : > { %2719 = vmatmul.mubr.msk.f32.gmra.mrb[14].mxu1 %vm285_vm1, %v3269_v30  ;;  %2720 = vmatprep.subr.msk.mxu0 %vm292_vm0, %v1663_v20  ;;  %v3339_v30 = vld [vmem:[%s3187_s26 + $0xa] sm:$0xff] }
  0x7c   : > { %2724 = vmatprep.subr.msk.mxu1 %vm292_vm0, %v1665_v21  ;;  %2721 = vmatpush1.msk.msra.mxu0 %vm292_vm0, %v1662_v22 }
  0x7d   : > { %2725 = vmatpush1.msk.msra.mxu1 %vm292_vm0, %v1664_v28  ;;  %1796 = vmatprep.mubr.f32.mxu0 %v3073_v0  ;;  %v2410_v28 = vsub.s32 6, %v3397_v11 }
  0x7e   : > { %1873 = vmatprep.mubr.f32.mxu1 %v3073_v0  ;;  %2722 = vmatmul.mubr.msk.f32.vlgmr.msra.gmra.mrb[0].mxu0 %vm285_vm1, %v3329_v32 }
  0x7f   : > { %2726 = vmatmul.mubr.msk.f32.vlgmr.msra.gmra.mrb[0].mxu1 %vm285_vm1, %v3329_v32  ;;  %2831 = vmatprep.subr.bf16.mxu0 %v2830_v33  ;;  %v2414_v33 = vsub.s32 7, %v3397_v11  ;;  %v2411_v44 = vrot.slane %v2380_v13, %v2410_v28 }
  0x80   : > { %2835 = vmatprep.subr.bf16.mxu1 %v2834_v34  ;;  %2833 = vmatpush1.bf16.msra.mxu0 %v2832_v35 }
  0x81   : > { %2837 = vmatpush1.bf16.msra.mxu1 %v2836_v36  ;;  %1802 = vmatprep.mubr.f32.mxu0 %v3073_v0  ;;  %v2415_v48 = vrot.slane %v2380_v13, %v2414_v33 }
  0x82   : > { %1879 = vmatprep.mubr.f32.mxu1 %v3073_v0  ;;  %2723 = vmatmul.mubr.msk.f32.gmra.mrb[2].mxu0 %vm285_vm1, %v3339_v30 }
  0x83   : > { %2727 = vmatmul.mubr.msk.f32.gmra.mrb[2].mxu1 %vm285_vm1, %v3339_v30  ;;  %2728 = vmatprep.subr.msk.mxu0 %vm292_vm0, %v1667_v37 }
  0x84   : > { %2732 = vmatprep.subr.msk.mxu1 %vm292_vm0, %v1669_v38  ;;  %2729 = vmatpush1.msk.msra.mxu0 %vm292_vm0, %v1666_v39 }
  0x85   : > { %2733 = vmatpush1.msk.msra.mxu1 %vm292_vm0, %v1668_v46  ;;  %1950 = vmatprep.mubr.f32.mxu0 %v3073_v0 }
  0x86   : > { %2027 = vmatprep.mubr.f32.mxu1 %v3073_v0  ;;  %2730 = vmatmul.mubr.msk.f32.vlgmr.msra.gmra.mrb[4].mxu0 %vm285_vm1, %v3329_v32 }
  0x87   : > { %2734 = vmatmul.mubr.msk.f32.vlgmr.msra.gmra.mrb[4].mxu1 %vm285_vm1, %v3329_v32  ;;  %2839 = vmatprep.subr.bf16.mxu0 %v2838_v49 }
  0x88   : > { %2843 = vmatprep.subr.bf16.mxu1 %v2842_v50  ;;  %2841 = vmatpush1.bf16.msra.mxu0 %v2840_v51 }
  0x89   : > { %2845 = vmatpush1.bf16.msra.mxu1 %v2844_v52  ;;  %1956 = vmatprep.mubr.f32.mxu0 %v3073_v0 }
  0x8a   : > { %2033 = vmatprep.mubr.f32.mxu1 %v3073_v0  ;;  %2731 = vmatmul.mubr.msk.f32.gmra.mrb[6].mxu0 %vm285_vm1, %v3339_v30 }
  0x8b   : > { %2735 = vmatmul.mubr.msk.f32.gmra.mrb[6].mxu1 %vm285_vm1, %v3339_v30  ;;  %2736 = vmatprep.subr.msk.mxu0 %vm292_vm0, %v1671_v53 }
  0x8c   : > { %2740 = vmatprep.subr.msk.mxu1 %vm292_vm0, %v1673_v54  ;;  %2737 = vmatpush1.msk.msra.mxu0 %vm292_vm0, %v1670_v55 }
  0x8d   : > { %2741 = vmatpush1.msk.msra.mxu1 %vm292_vm0, %v1672_v62  ;;  %2104 = vmatprep.mubr.f32.mxu0 %v3073_v0 }
  0x8e   : > { %2181 = vmatprep.mubr.f32.mxu1 %v3073_v0  ;;  %2738 = vmatmul.mubr.msk.f32.vlgmr.msra.gmra.mrb[8].mxu0 %vm285_vm1, %v3329_v32 }
  0x8f   : > { %2742 = vmatmul.mubr.msk.f32.vlgmr.msra.gmra.mrb[8].mxu1 %vm285_vm1, %v3329_v32  ;;  %2847 = vmatprep.subr.bf16.mxu0 %v2846_v2 }
  0x90   : > { %2851 = vmatprep.subr.bf16.mxu1 %v2850_v3  ;;  %2849 = vmatpush1.bf16.msra.mxu0 %v2848_v4 }
  0x91   : > { %2853 = vmatpush1.bf16.msra.mxu1 %v2852_v5  ;;  %2110 = vmatprep.mubr.f32.mxu0 %v3073_v0 }
  0x92   : > { %2187 = vmatprep.mubr.f32.mxu1 %v3073_v0  ;;  %2739 = vmatmul.mubr.msk.f32.gmra.mrb[10].mxu0 %vm285_vm1, %v3339_v30 }
  0x93   : > { %2743 = vmatmul.mubr.msk.f32.gmra.mrb[10].mxu1 %vm285_vm1, %v3339_v30  ;;  %2744 = vmatprep.subr.msk.mxu0 %vm292_vm0, %v1675_v6  ;;  %v2419_v6 = vrot.slane %v2381_v59, %v2386_v12 }
  0x94   : > { %2748 = vmatprep.subr.msk.mxu1 %vm292_vm0, %v1677_v7  ;;  %2745 = vmatpush1.msk.msra.mxu0 %vm292_vm0, %v1674_v8 }
  0x95   : > { %2749 = vmatpush1.msk.msra.mxu1 %vm292_vm0, %v1676_v9  ;;  %2258 = vmatprep.mubr.f32.mxu0 %v3073_v0 }
  0x96   : > { %2335 = vmatprep.mubr.f32.mxu1 %v3073_v0  ;;  %2746 = vmatmul.mubr.msk.f32.vlgmr.msra.gmra.mrb[12].mxu0 %vm285_vm1, %v3329_v32 }
  0x97   : > { %2750 = vmatmul.mubr.msk.f32.vlgmr.msra.gmra.mrb[12].mxu1 %vm285_vm1, %v3329_v32  ;;  %2264 = vmatprep.mubr.f32.mxu0 %v3073_v0 }
  0x98   : > { %2341 = vmatprep.mubr.f32.mxu1 %v3073_v0  ;;  %v2398_v0 = vsub.s32 3, %v3397_v11 }
  0x9a   : > { %2747 = vmatmul.mubr.msk.f32.gmra.mrb[14].mxu0 %vm285_vm1, %v3339_v30  ;;  %v2399_v20 = vrot.slane %v2380_v13, %v2398_v0  ;;  %v2423_v13 = vrot.slane %v2381_v59, %v2390_v15  ;;  %v2431_v12 = vrot.slane %v2381_v59, %v2398_v0 }
  0x9b   : > { %2751 = vmatmul.mubr.msk.f32.gmra.mrb[14].mxu1 %vm285_vm1, %v3339_v30 }
 0x151   : > { %v1798_v21 = vpop.f32.mrb[0].mxu0 }
 0x152   : > { %v2464_v22 = vadd.f32 %v2387_v16, %v1798_v21  ;;  %v1875_v23 = vpop.f32.mrb[0].mxu1  ;;  %v1800_v24 = vpop.f32.mrb[1].mxu0 }
 0x153   : > { %v2466_v17 = vadd.f32 %v2395_v18, %v1875_v23  ;;  %v2465_v26 = vadd.f32 %v2391_v19, %v1800_v24  ;;  %v1877_v27 = vpop.f32.mrb[1].mxu1 }
 0x154   : > { %v2496_v31 = vmax.f32 %v2464_v22, 0.0  ;;  %v2467_v32 = vadd.f32 %v2399_v20, %v1877_v27 }
 0x155   : > { %v2498_v34 = vmax.f32 %v2466_v17, 0.0  ;;  %v2497_v35 = vmax.f32 %v2465_v26, 0.0  ;;  %v1804_v36 = vpop.f32.mrb[2].mxu0 }
 0x156   : > { %2528 = vst [vmem:[%s3421_s4] sm:$0xff] %v2496_v31  ;;  %v2499_v30 = vmax.f32 %v2467_v32, 0.0  ;;  %v2480_v37 = vadd.f32 %v2387_v16, %v1804_v36  ;;  %v1881_v38 = vpop.f32.mrb[2].mxu1  ;;  %v1806_v39 = vpop.f32.mrb[3].mxu0 }
 0x157   : > { %2530 = vst [vmem:[%s3421_s4 + $0x10] sm:$0xff] %v2498_v34  ;;  %2529 = vst [vmem:[%s3421_s4 + $0x8] sm:$0xff] %v2497_v35  ;;  %v2482_v41 = vadd.f32 %v2395_v18, %v1881_v38  ;;  %v2481_v42 = vadd.f32 %v2391_v19, %v1806_v39  ;;  %v1883_v43 = vpop.f32.mrb[3].mxu1  ;;  %v2435_v38 = vrot.slane %v2381_v59, %v2402_v25 }
 0x158   : > { %2531 = vst [vmem:[%s3421_s4 + $0x18] sm:$0xff] %v2499_v30  ;;  %v2512_v46 = vmax.f32 %v2480_v37, 0.0  ;;  %v2483_v47 = vadd.f32 %v2399_v20, %v1883_v43  ;;  %v2439_v43 = vrot.slane %v2381_v59, %v2406_v29  ;;  %v2447_v25 = vrot.slane %v2381_v59, %v2414_v33 }
 0x159   : > { %v2514_v49 = vmax.f32 %v2482_v41, 0.0  ;;  %v2513_v50 = vmax.f32 %v2481_v42, 0.0  ;;  %v1952_v51 = vpop.f32.mrb[4].mxu0  ;;  %v2443_v42 = vrot.slane %v2381_v59, %v2410_v28 }
 0x15a   : > { %2544 = vst [vmem:[%s3421_s4 + $0x80] sm:$0xff] %v2512_v46  ;;  %v2515_v52 = vmax.f32 %v2483_v47, 0.0  ;;  %v2468_v53 = vadd.f32 %v2403_v40, %v1952_v51  ;;  %v2029_v54 = vpop.f32.mrb[4].mxu1  ;;  %v1954_v55 = vpop.f32.mrb[5].mxu0 }
 0x15b   : > { %2546 = vst [vmem:[%s3421_s4 + $0x90] sm:$0xff] %v2514_v49  ;;  %2545 = vst [vmem:[%s3421_s4 + $0x88] sm:$0xff] %v2513_v50  ;;  %v2470_v56 = vadd.f32 %v2411_v44, %v2029_v54  ;;  %v2469_v57 = vadd.f32 %v2407_v45, %v1954_v55  ;;  %v2031_v58 = vpop.f32.mrb[5].mxu1 }
 0x15c   : > { %2547 = vst [vmem:[%s3421_s4 + $0x98] sm:$0xff] %v2515_v52  ;;  %v2500_v60 = vmax.f32 %v2468_v53, 0.0  ;;  %v2471_v61 = vadd.f32 %v2415_v48, %v2031_v58 }
 0x15d   : > { %v2502_v62 = vmax.f32 %v2470_v56, 0.0  ;;  %v2501_v63 = vmax.f32 %v2469_v57, 0.0  ;;  %v1958_v1 = vpop.f32.mrb[6].mxu0 }
 0x15e   : > { %2532 = vst [vmem:[%s3421_s4 + $0x20] sm:$0xff] %v2500_v60  ;;  %v2503_v2 = vmax.f32 %v2471_v61, 0.0  ;;  %v2484_v3 = vadd.f32 %v2403_v40, %v1958_v1  ;;  %v2035_v4 = vpop.f32.mrb[6].mxu1  ;;  %v1960_v5 = vpop.f32.mrb[7].mxu0 }
 0x15f   : > { %2534 = vst [vmem:[%s3421_s4 + $0x30] sm:$0xff] %v2502_v62  ;;  %2533 = vst [vmem:[%s3421_s4 + $0x28] sm:$0xff] %v2501_v63  ;;  %v2486_v7 = vadd.f32 %v2411_v44, %v2035_v4  ;;  %v2485_v8 = vadd.f32 %v2407_v45, %v1960_v5  ;;  %v2037_v9 = vpop.f32.mrb[7].mxu1 }
 0x160   : > { %2535 = vst [vmem:[%s3421_s4 + $0x38] sm:$0xff] %v2503_v2  ;;  %v2516_v16 = vmax.f32 %v2484_v3, 0.0  ;;  %v2487_v18 = vadd.f32 %v2415_v48, %v2037_v9 }
 0x161   : > { %v2518_v19 = vmax.f32 %v2486_v7, 0.0  ;;  %v2517_v20 = vmax.f32 %v2485_v8, 0.0  ;;  %v2106_v21 = vpop.f32.mrb[8].mxu0 }
 0x162   : > { %2548 = vst [vmem:[%s3421_s4 + $0xa0] sm:$0xff] %v2516_v16  ;;  %v2519_v22 = vmax.f32 %v2487_v18, 0.0  ;;  %v2472_v23 = vadd.f32 %v2419_v6, %v2106_v21  ;;  %v2183_v24 = vpop.f32.mrb[8].mxu1  ;;  %v2108_v17 = vpop.f32.mrb[9].mxu0 }
 0x163   : > { %2550 = vst [vmem:[%s3421_s4 + $0xb0] sm:$0xff] %v2518_v19  ;;  %2549 = vst [vmem:[%s3421_s4 + $0xa8] sm:$0xff] %v2517_v20  ;;  %v2474_v14 = vadd.f32 %v2427_v10, %v2183_v24  ;;  %v2473_v15 = vadd.f32 %v2423_v13, %v2108_v17  ;;  %v2185_v26 = vpop.f32.mrb[9].mxu1 }
 0x164   : > { %2551 = vst [vmem:[%s3421_s4 + $0xb8] sm:$0xff] %v2519_v22  ;;  %v2504_v27 = vmax.f32 %v2472_v23, 0.0  ;;  %v2475_v31 = vadd.f32 %v2431_v12, %v2185_v26 }
 0x165   : > { %v2506_v0 = vmax.f32 %v2474_v14, 0.0  ;;  %v2505_v32 = vmax.f32 %v2473_v15, 0.0  ;;  %v2112_v34 = vpop.f32.mrb[10].mxu0 }
 0x166   : > { %2536 = vst [vmem:[%s3421_s4 + $0x40] sm:$0xff] %v2504_v27  ;;  %v2507_v35 = vmax.f32 %v2475_v31, 0.0  ;;  %v2488_v36 = vadd.f32 %v2419_v6, %v2112_v34  ;;  %v2189_v30 = vpop.f32.mrb[10].mxu1  ;;  %v2114_v37 = vpop.f32.mrb[11].mxu0 }
 0x167   : > { %2538 = vst [vmem:[%s3421_s4 + $0x50] sm:$0xff] %v2506_v0  ;;  %2537 = vst [vmem:[%s3421_s4 + $0x48] sm:$0xff] %v2505_v32  ;;  %v2490_v39 = vadd.f32 %v2427_v10, %v2189_v30  ;;  %v2489_v40 = vadd.f32 %v2423_v13, %v2114_v37  ;;  %v2191_v41 = vpop.f32.mrb[11].mxu1 }
 0x168   : > { %2539 = vst [vmem:[%s3421_s4 + $0x58] sm:$0xff] %v2507_v35  ;;  %v2520_v44 = vmax.f32 %v2488_v36, 0.0  ;;  %v2491_v45 = vadd.f32 %v2431_v12, %v2191_v41 }
 0x169   : > { %v2522_v46 = vmax.f32 %v2490_v39, 0.0  ;;  %v2521_v47 = vmax.f32 %v2489_v40, 0.0  ;;  %v2260_v48 = vpop.f32.mrb[12].mxu0 }
 0x16a   : > { %2552 = vst [vmem:[%s3421_s4 + $0xc0] sm:$0xff] %v2520_v44  ;;  %v2523_v49 = vmax.f32 %v2491_v45, 0.0  ;;  %v2476_v50 = vadd.f32 %v2435_v38, %v2260_v48  ;;  %v2337_v51 = vpop.f32.mrb[12].mxu1  ;;  %v2262_v52 = vpop.f32.mrb[13].mxu0 }
 0x16b   : > { %2554 = vst [vmem:[%s3421_s4 + $0xd0] sm:$0xff] %v2522_v46  ;;  %2553 = vst [vmem:[%s3421_s4 + $0xc8] sm:$0xff] %v2521_v47  ;;  %v2478_v28 = vadd.f32 %v2443_v42, %v2337_v51  ;;  %v2477_v29 = vadd.f32 %v2439_v43, %v2262_v52  ;;  %v2339_v53 = vpop.f32.mrb[13].mxu1 }
 0x16c   : > { %2555 = vst [vmem:[%s3421_s4 + $0xd8] sm:$0xff] %v2523_v49  ;;  %v2508_v11 = vmax.f32 %v2476_v50, 0.0  ;;  %v2479_v33 = vadd.f32 %v2447_v25, %v2339_v53 }
 0x16d   : > { %v2510_v54 = vmax.f32 %v2478_v28, 0.0  ;;  %v2509_v55 = vmax.f32 %v2477_v29, 0.0  ;;  %v2266_v56 = vpop.f32.mrb[14].mxu0 }
 0x16e   : > { %2540 = vst [vmem:[%s3421_s4 + $0x60] sm:$0xff] %v2508_v11  ;;  %v2511_v57 = vmax.f32 %v2479_v33, 0.0  ;;  %v2492_v58 = vadd.f32 %v2435_v38, %v2266_v56  ;;  %v2343_v59 = vpop.f32.mrb[14].mxu1  ;;  %v2268_v60 = vpop.f32.mrb[15].mxu0 }
 0x16f   : > { %2542 = vst [vmem:[%s3421_s4 + $0x70] sm:$0xff] %v2510_v54  ;;  %2541 = vst [vmem:[%s3421_s4 + $0x68] sm:$0xff] %v2509_v55  ;;  %v2494_v61 = vadd.f32 %v2443_v42, %v2343_v59  ;;  %v2493_v62 = vadd.f32 %v2439_v43, %v2268_v60  ;;  %v2345_v63 = vpop.f32.mrb[15].mxu1 }
 0x170   : > { %2543 = vst [vmem:[%s3421_s4 + $0x78] sm:$0xff] %v2511_v57  ;;  %v2524_v1 = vmax.f32 %v2492_v58, 0.0  ;;  %v2495_v2 = vadd.f32 %v2447_v25, %v2345_v63 }
 0x171   : > { %v2526_v3 = vmax.f32 %v2494_v61, 0.0  ;;  %v2525_v4 = vmax.f32 %v2493_v62, 0.0 }
 0x172   : > { %2556 = vst [vmem:[%s3421_s4 + $0xe0] sm:$0xff] %v2524_v1  ;;  %v2527_v5 = vmax.f32 %v2495_v2, 0.0 }
 0x173   : > { %2558 = vst [vmem:[%s3421_s4 + $0xf0] sm:$0xff] %v2526_v3  ;;  %2557 = vst [vmem:[%s3421_s4 + $0xe8] sm:$0xff] %v2525_v4 }
 0x174   : > { %2559 = vst [vmem:[%s3421_s4 + $0xf8] sm:$0xff] %v2527_v5 }
 0x175   : > { %3015 = shalt.err (!%p3012_p7)
}
 0x176   : > { %s3016_s25 = scalar_lea.hbm %s3483_s16, 4096  ;;  %s3020_s28 = scalar_lea.hbm %s3537_s3, 8192 }
 0x177   : > { %p3017_p8 = scmp.ne.s32.totalorder %s3483_s16, %s3016_s25  ;;  %p3021_p1 = scmp.lt.u32.totalorder %s3483_s16, %s3537_s3 }
 0x178   : > { %p3022_p0 = scmp.lt.u32.totalorder %s3020_s28, %s3016_s25  ;;  %p3024_p6 = scmp.lt.u32.totalorder %s3016_s25, %s3483_s16 }
 0x179   : > { %p3018_p11 = pnand %p3017_p8, %p3548_p9 }
 0x17a   : > { %p3023_p5 = por %p3022_p0, %p3021_p1 }
 0x17b   : > { %p3019_p13 = pneg %p3018_p11 }
 0x17c   : > { %p3025_p10 = por %p3024_p6, %p3023_p5 }
 0x17e   : > { %p3026_p12 = pnand %p3025_p10, %p3019_p13 }
 0x180   : > { %3029 = shalt.err (!%p3026_p12)
}
 0x181   : > { %s3075_s4 = smov 2048   ;;  %s3076_s5 = smov 128  }
 0x182   : > { %2923 = dma.vmem_to_hbm [thread:$0]  (%p3548_p9), %s3485_s8, 4096, %s3483_s16, %s3493_s11, %s3075_s4, %s3075_s4, %s3076_s5  }
 0x183 PF: > { %p2935_p2 = scmp.ge.s32.totalorder %s3068_s15, 2  ;;  %s2589_s6 = sand.u32 1, %s3056_s12  }
 0x184   : > { %p3549_p3 = scmp.ne.s32.totalorder %s3542_s23, 0  ;;  %s2590_s7 = scalar_lea.sflag [#allocation4], %s2589_s6 }
 0x186   : > { %p2930_p4 = pnand %p2935_p2, %p3549_p3 }
 0x188   : > { %3051 = dma.done.wait (!%p2930_p4), %s2590_s7, 4096  }
 0x189   : > { %3053 = vsyncadd (!%p2930_p4), %s2590_s7, 4294963200  ;;  %p14_p7 = scmp.ge.s32.totalorder %s3122_s18, 4   ;;  %s3550_s12 = smov %s3060_s13 }
 0x18a   : > { %s3551_s13 = smov %s3064_s14  ;;  %s3552_s14 = smov %s3133_s21 }
 0x18b   : > { %s3553_s15 = smov %s3122_s18  ;;  %16 = sbr.rel (!%p14_p7) target bundleno = 4 (0x4), region = 74 }
 0x192   :  { %2595 = vsyncpa [#allocation3], 1 }
 0x193   :  { %2597 = vsyncpa [#allocation3 + $0x1], 1 }
 0x194   :  { %2598 = vsyncpa [#allocation4], 1 }
 0x195   :  { %2600 = vsyncpa [#allocation4 + $0x1], 1 }

</bundles_post_ra>
